<compile_context>
chip_gen: v5e
topology: v5e:2x2
jax: 0.10.0
libtpu: 0.0.40
codegen_flags: <defaults>
</compile_context>

<pallas_src>
import functools

import jax
import jax.numpy as jnp
from jax.experimental import pallas as pl
from jax.experimental.pallas import tpu as pltpu

EPS = 1e-5
LANE = 128          # vreg lane width
SUBLANE = 8         # f32 sublanes per vreg
STATS_ROWS = 8      # per-channel stats buffer: row 0 = sum, row 1 = sum of squares


def _round_up(x, m):
    return (x + m - 1) // m * m


# ---------------------------------------------------------------------------
# Kernels
# ---------------------------------------------------------------------------

def _fused_kernel(p_ref, w_ref, b_ref, g1_ref, be1_ref, g2_ref, be2_ref, o_ref,
                  *, m_real):
    """Single-shot conv + BN1 + ReLU + BN2 (whole problem resident in VMEM)."""
    y = jnp.dot(p_ref[...], w_ref[...],
                preferred_element_type=jnp.float32) + b_ref[...]
    inv_m = 1.0 / m_real

    # BN1 (batch stats, one pass: var = E[y^2] - mean^2)
    mean1 = jnp.sum(y, axis=0, keepdims=True) * inv_m
    var1 = jnp.sum(y * y, axis=0, keepdims=True) * inv_m - mean1 * mean1
    y = (y - mean1) * jax.lax.rsqrt(var1 + EPS) * g1_ref[...] + be1_ref[...]

    # ReLU
    y = jnp.maximum(y, 0.0)

    # BN2
    mean2 = jnp.sum(y, axis=0, keepdims=True) * inv_m
    var2 = jnp.sum(y * y, axis=0, keepdims=True) * inv_m - mean2 * mean2
    o_ref[...] = (y - mean2) * jax.lax.rsqrt(var2 + EPS) * g2_ref[...] + be2_ref[...]


def _conv_stats_kernel(p_ref, w_ref, b_ref, stats_ref, *, m_real, tm):
    """Pass 1: conv per M-tile, accumulate per-channel sum / sumsq of y."""
    m = pl.program_id(0)

    @pl.when(m == 0)
    def _():
        stats_ref[...] = jnp.zeros_like(stats_ref)

    y = jnp.dot(p_ref[...], w_ref[...],
                preferred_element_type=jnp.float32) + b_ref[...]

    # Mask rows past the real M (zero-padded patch rows still get the bias).
    row = jax.lax.broadcasted_iota(jnp.int32, (tm, 1), 0) + m * tm
    ym = jnp.where(row < m_real, y, 0.0)

    s = jnp.sum(ym, axis=0, keepdims=True)
    sq = jnp.sum(ym * ym, axis=0, keepdims=True)
    pad = jnp.zeros((STATS_ROWS - 2, s.shape[1]), jnp.float32)
    stats_ref[...] += jnp.concatenate([s, sq, pad], axis=0)


def _bn1_stats_kernel(stats1_ref, p_ref, w_ref, b_ref, g1_ref, be1_ref,
                      stats2_ref, *, m_real, tm):
    """Pass 2: recompute conv, apply BN1 + ReLU, accumulate stats for BN2."""
    m = pl.program_id(0)

    @pl.when(m == 0)
    def _():
        stats2_ref[...] = jnp.zeros_like(stats2_ref)

    y = jnp.dot(p_ref[...], w_ref[...],
                preferred_element_type=jnp.float32) + b_ref[...]
    inv_m = 1.0 / m_real
    st1 = stats1_ref[...]
    mean1 = st1[0:1, :] * inv_m
    var1 = st1[1:2, :] * inv_m - mean1 * mean1
    z = (y - mean1) * jax.lax.rsqrt(var1 + EPS) * g1_ref[...] + be1_ref[...]
    z = jnp.maximum(z, 0.0)

    row = jax.lax.broadcasted_iota(jnp.int32, (tm, 1), 0) + m * tm
    zm = jnp.where(row < m_real, z, 0.0)

    s = jnp.sum(zm, axis=0, keepdims=True)
    sq = jnp.sum(zm * zm, axis=0, keepdims=True)
    pad = jnp.zeros((STATS_ROWS - 2, s.shape[1]), jnp.float32)
    stats2_ref[...] += jnp.concatenate([s, sq, pad], axis=0)


def _final_kernel(stats1_ref, stats2_ref, p_ref, w_ref, b_ref,
                  g1_ref, be1_ref, g2_ref, be2_ref, o_ref, *, m_real):
    """Pass 3: recompute conv, apply BN1 + ReLU + BN2, write the output tile."""
    y = jnp.dot(p_ref[...], w_ref[...],
                preferred_element_type=jnp.float32) + b_ref[...]
    inv_m = 1.0 / m_real

    st1 = stats1_ref[...]
    mean1 = st1[0:1, :] * inv_m
    var1 = st1[1:2, :] * inv_m - mean1 * mean1
    z = (y - mean1) * jax.lax.rsqrt(var1 + EPS) * g1_ref[...] + be1_ref[...]
    z = jnp.maximum(z, 0.0)

    st2 = stats2_ref[...]
    mean2 = st2[0:1, :] * inv_m
    var2 = st2[1:2, :] * inv_m - mean2 * mean2
    o_ref[...] = (z - mean2) * jax.lax.rsqrt(var2 + EPS) * g2_ref[...] + be2_ref[...]


# ---------------------------------------------------------------------------
# Host-side helpers / wrapper
# ---------------------------------------------------------------------------

def im2col_nchw(x, k, stride, pad, k_pad):
    """x: (N, Cin, H, W) -> patches (N*Ho*Wo, k_pad) zero-padded along K."""
    N, Cin, H, W = x.shape
    Ho = (H + 2 * pad - k) // stride + 1
    Wo = (W + 2 * pad - k) // stride + 1
    xp = jnp.pad(x, ((0, 0), (0, 0), (pad, pad), (pad, pad)))
    cols = []
    for ki in range(k):
        for kj in range(k):
            cols.append(xp[:, :, ki:ki + stride * Ho:stride,
                              kj:kj + stride * Wo:stride])      # (N, Cin, Ho, Wo)
    patches = jnp.stack(cols, axis=2)                # (N, Cin, k*k, Ho, Wo)
    patches = patches.transpose(0, 3, 4, 1, 2)       # (N, Ho, Wo, Cin, k*k)
    patches = patches.reshape(N * Ho * Wo, Cin * k * k)
    K = Cin * k * k
    patches = jnp.pad(patches, ((0, 0), (0, k_pad - K)))
    return patches, Ho, Wo


def _tiled_forward(patches, w_mat, b2, g1p, be1p, g2p, be2p,
                   *, m_real, tm, k_pad, cout_pad):
    m_pad = patches.shape[0]
    num_tiles = m_pad // tm

    p_spec = pl.BlockSpec((tm, k_pad), lambda m: (m, 0))
    w_spec = pl.BlockSpec((k_pad, cout_pad), lambda m: (0, 0))
    vec_spec = pl.BlockSpec((1, cout_pad), lambda m: (0, 0))
    stats_spec = pl.BlockSpec((STATS_ROWS, cout_pad), lambda m: (0, 0))

    stats_shape = jax.ShapeDtypeStruct((STATS_ROWS, cout_pad), jnp.float32)
    reduce_params = pltpu.CompilerParams(dimension_semantics=("arbitrary",),
                                         vmem_limit_bytes=32 * 1024 * 1024)
    apply_params = pltpu.CompilerParams(dimension_semantics=("parallel",),
                                        vmem_limit_bytes=32 * 1024 * 1024)

    # Pass 1: per-channel sum / sumsq of the conv output.
    stats1 = pl.pallas_call(
        functools.partial(_conv_stats_kernel, m_real=m_real, tm=tm),
        out_shape=stats_shape,
        grid=(num_tiles,),
        in_specs=[p_spec, w_spec, vec_spec],
        out_specs=stats_spec,
        compiler_params=reduce_params,
    )(patches, w_mat, b2)

    # Pass 2: BN1 + ReLU, per-channel sum / sumsq of the result.
    stats2 = pl.pallas_call(
        functools.partial(_bn1_stats_kernel, m_real=m_real, tm=tm),
        out_shape=stats_shape,
        grid=(num_tiles,),
        in_specs=[stats_spec, p_spec, w_spec, vec_spec, vec_spec, vec_spec],
        out_specs=stats_spec,
        compiler_params=reduce_params,
    )(stats1, patches, w_mat, b2, g1p, be1p)

    # Pass 3: apply BN1 + ReLU + BN2, write lane-dense output tiles.
    out_flat = pl.pallas_call(
        functools.partial(_final_kernel, m_real=m_real),
        out_shape=jax.ShapeDtypeStruct((m_pad, cout_pad), jnp.float32),
        grid=(num_tiles,),
        in_specs=[stats_spec, stats_spec, p_spec, w_spec,
                  vec_spec, vec_spec, vec_spec, vec_spec, vec_spec],
        out_specs=pl.BlockSpec((tm, cout_pad), lambda m: (m, 0)),
        compiler_params=apply_params,
    )(stats1, stats2, patches, w_mat, b2, g1p, be1p, g2p, be2p)
    return out_flat


def encoder_block_forward(x, params, *, kernel_size=3, stride=2, padding=1,
                          tile_m=512, force_tiled=False):
    """x: (N, Cin, H, W) float32 -> (N, Cout, Ho, Wo) float32 (NCHW, like PyTorch)."""
    N, Cin, H, W = x.shape
    w, b, g1, be1, g2, be2 = params
    Cout = w.shape[0]
    k = kernel_size

    K = Cin * k * k
    K_pad = _round_up(max(K, SUBLANE), SUBLANE)      # 27 -> 32: aligned MXU K tiles
    Cout_pad = _round_up(Cout, LANE)                 # 8 -> 128: lane-dense output

    patches, Ho, Wo = im2col_nchw(x, k, stride, padding, K_pad)   # (M, K_pad)
    M = N * Ho * Wo

    # Weight as (K_pad, Cout_pad) matmul RHS; zero padding contributes nothing and
    # keeps padded channels identically 0 through both BNs (gamma/beta pads = 0).
    w_mat = jnp.pad(w.reshape(Cout, K).T,
                    ((0, K_pad - K), (0, Cout_pad - Cout)))

    def pad_vec(v):
        return jnp.pad(v, (0, Cout_pad - Cout)).reshape(1, Cout_pad)

    b2, g1p, be1p, g2p, be2p = (pad_vec(v) for v in (b, g1, be1, g2, be2))

    # Gate: fused single-call while the resident footprint is comfortably in VMEM
    # (valid on v5e/v6e/v7x with the explicit 48 MiB limit below); otherwise the
    # tiled streaming-stats path.
    fused_ok = (not force_tiled) and (M <= 8192)

    if fused_ok:
        out_flat = pl.pallas_call(
            functools.partial(_fused_kernel, m_real=M),
            out_shape=jax.ShapeDtypeStruct((M, Cout_pad), jnp.float32),
            in_specs=[pl.BlockSpec(memory_space=pltpu.MemorySpace.VMEM)] * 7,
            out_specs=pl.BlockSpec(memory_space=pltpu.MemorySpace.VMEM),
            compiler_params=pltpu.CompilerParams(
                vmem_limit_bytes=48 * 1024 * 1024),
        )(patches, w_mat, b2, g1p, be1p, g2p, be2p)
    else:
        tm = _round_up(min(tile_m, _round_up(M, SUBLANE)), SUBLANE)
        m_pad = _round_up(M, tm)
        if m_pad != M:
            patches = jnp.pad(patches, ((0, m_pad - M), (0, 0)))
        out_flat = _tiled_forward(patches, w_mat, b2, g1p, be1p, g2p, be2p,
                                  m_real=M, tm=tm, k_pad=K_pad,
                                  cout_pad=Cout_pad)

    out = out_flat[:M, :Cout].reshape(N, Ho, Wo, Cout)
    # NHWC -> NCHW only to match the PyTorch module's output layout.
    return out.transpose(0, 3, 1, 2)


# ---------------------------------------------------------------------------
# Reference (pure JAX) and demo
# ---------------------------------------------------------------------------

def encoder_block_reference(x, params, *, kernel_size=3, stride=2, padding=1):
    w, b, g1, be1, g2, be2 = params
    y = jax.lax.conv_general_dilated(
        x, w, window_strides=(stride, stride),
        padding=((padding, padding), (padding, padding)),
        dimension_numbers=("NCHW", "OIHW", "NCHW"),
        precision=jax.lax.Precision.HIGHEST)
    y = y + b.reshape(1, -1, 1, 1)

    def bn(t, g, be):
        mean = jnp.mean(t, axis=(0, 2, 3), keepdims=True)
        var = jnp.mean((t - mean) ** 2, axis=(0, 2, 3), keepdims=True)
        return ((t - mean) * jax.lax.rsqrt(var + EPS)
                * g.reshape(1, -1, 1, 1) + be.reshape(1, -1, 1, 1))

    y = bn(y, g1, be1)
    y = jnp.maximum(y, 0.0)
    return bn(y, g2, be2)


def init_params(key, Cin, Cout, k):
    kw, kb = jax.random.split(key)
    fan_in = Cin * k * k
    bound = 1.0 / (fan_in ** 0.5)
    w = jax.random.uniform(kw, (Cout, Cin, k, k), jnp.float32, -bound, bound)
    b = jax.random.uniform(kb, (Cout,), jnp.float32, -bound, bound)
    g1 = jnp.ones((Cout,), jnp.float32)
    be1 = jnp.zeros((Cout,), jnp.float32)
    g2 = jnp.ones((Cout,), jnp.float32)
    be2 = jnp.zeros((Cout,), jnp.float32)
    return (w, b, g1, be1, g2, be2)


if __name__ == "__main__":
    # EncoderBlock(input_channel=3, output_channel=8) on a small NCHW batch.
    N, Cin, H, W = 2, 3, 16, 16
    Cout, k = 8, 3

    key = jax.random.PRNGKey(0)
    kx, kx2, kp = jax.random.split(key, 3)
    params = init_params(kp, Cin, Cout, k)

    # 1) Spec-sized input -> fused single-call path.
    x = jax.random.normal(kx, (N, Cin, H, W), jnp.float32)
    out = jax.block_until_ready(encoder_block_forward(x, params))
    assert out.shape == (N, Cout, H // 2, W // 2), out.shape
    ref = encoder_block_reference(x, params)
    assert jnp.allclose(out, ref, rtol=5e-3, atol=5e-3), "fused path mismatch"

    # 2) Slightly larger input with the tiled streaming-stats path forced on
    #    (grid of 4 M-tiles) to exercise the scalable path.
    x2 = jax.random.normal(kx2, (N, Cin, 32, 32), jnp.float32)
    out2 = jax.block_until_ready(
        encoder_block_forward(x2, params, force_tiled=True, tile_m=128))
    assert out2.shape == (N, Cout, 16, 16), out2.shape
    ref2 = encoder_block_reference(x2, params)
    assert jnp.allclose(out2, ref2, rtol=5e-3, atol=5e-3), "tiled path mismatch"

    print("KERNEL_OK")
</pallas_src>

<mosaic_0001>
module attributes {stable_mosaic.version = 11 : i64} {
  func.func @_fused_kernel(%arg0: memref<128x32xf32, #tpu.memory_space<vmem>>, %arg1: memref<32x128xf32, #tpu.memory_space<vmem>>, %arg2: memref<1x128xf32, #tpu.memory_space<vmem>>, %arg3: memref<1x128xf32, #tpu.memory_space<vmem>>, %arg4: memref<1x128xf32, #tpu.memory_space<vmem>>, %arg5: memref<1x128xf32, #tpu.memory_space<vmem>>, %arg6: memref<1x128xf32, #tpu.memory_space<vmem>>, %arg7: memref<128x128xf32, #tpu.memory_space<vmem>>) attributes {dimension_semantics = [], scalar_prefetch = 0 : i64, scratch_operands = 0 : i64, tpu.core_type = #tpu.core_type<tc>} {
    %c0 = arith.constant 0 : index
    %c0_0 = arith.constant 0 : index
    %0 = vector.load %arg0[%c0, %c0_0] : memref<128x32xf32, #tpu.memory_space<vmem>>, vector<128x32xf32>
    %c0_1 = arith.constant 0 : index
    %c0_2 = arith.constant 0 : index
    %1 = vector.load %arg1[%c0_1, %c0_2] : memref<32x128xf32, #tpu.memory_space<vmem>>, vector<32x128xf32>
    %cst = arith.constant dense<0.000000e+00> : vector<128x128xf32>
    %2 = tpu.matmul %0, %1, %cst {dimension_numbers = #tpu.dot_dimension_numbers<[1], [0], [0], [1], [0, 0, 1, 1], [], []>} : vector<128x32xf32>, vector<32x128xf32>, vector<128x128xf32> -> vector<128x128xf32>
    %c0_3 = arith.constant 0 : index
    %c0_4 = arith.constant 0 : index
    %3 = vector.load %arg2[%c0_3, %c0_4] : memref<1x128xf32, #tpu.memory_space<vmem>>, vector<1x128xf32>
    %4 = vector.broadcast %3 : vector<1x128xf32> to vector<128x128xf32>
    %5 = arith.addf %2, %4 : vector<128x128xf32>
    %cst_5 = arith.constant dense<0.000000e+00> : vector<128xf32>
    %6 = vector.multi_reduction <add>, %5, %cst_5 [0] : vector<128x128xf32> to vector<128xf32>
    %7 = vector.shape_cast %6 : vector<128xf32> to vector<1x128xf32>
    %cst_6 = arith.constant 7.812500e-03 : f32
    %8 = vector.broadcast %cst_6 : f32 to vector<1x128xf32>
    %9 = arith.mulf %7, %8 : vector<1x128xf32>
    %10 = arith.mulf %5, %5 : vector<128x128xf32>
    %cst_7 = arith.constant dense<0.000000e+00> : vector<128xf32>
    %11 = vector.multi_reduction <add>, %10, %cst_7 [0] : vector<128x128xf32> to vector<128xf32>
    %12 = vector.shape_cast %11 : vector<128xf32> to vector<1x128xf32>
    %cst_8 = arith.constant 7.812500e-03 : f32
    %13 = vector.broadcast %cst_8 : f32 to vector<1x128xf32>
    %14 = arith.mulf %12, %13 : vector<1x128xf32>
    %15 = arith.mulf %9, %9 : vector<1x128xf32>
    %16 = arith.subf %14, %15 : vector<1x128xf32>
    %17 = vector.broadcast %9 : vector<1x128xf32> to vector<128x128xf32>
    %18 = arith.subf %5, %17 : vector<128x128xf32>
    %cst_9 = arith.constant 9.99999974E-6 : f32
    %19 = vector.broadcast %cst_9 : f32 to vector<1x128xf32>
    %20 = arith.addf %16, %19 : vector<1x128xf32>
    %21 = math.rsqrt %20 : vector<1x128xf32>
    %22 = vector.broadcast %21 : vector<1x128xf32> to vector<128x128xf32>
    %23 = arith.mulf %18, %22 : vector<128x128xf32>
    %c0_10 = arith.constant 0 : index
    %c0_11 = arith.constant 0 : index
    %24 = vector.load %arg3[%c0_10, %c0_11] : memref<1x128xf32, #tpu.memory_space<vmem>>, vector<1x128xf32>
    %25 = vector.broadcast %24 : vector<1x128xf32> to vector<128x128xf32>
    %26 = arith.mulf %23, %25 : vector<128x128xf32>
    %c0_12 = arith.constant 0 : index
    %c0_13 = arith.constant 0 : index
    %27 = vector.load %arg4[%c0_12, %c0_13] : memref<1x128xf32, #tpu.memory_space<vmem>>, vector<1x128xf32>
    %28 = vector.broadcast %27 : vector<1x128xf32> to vector<128x128xf32>
    %29 = arith.addf %26, %28 : vector<128x128xf32>
    %cst_14 = arith.constant 0.000000e+00 : f32
    %30 = vector.broadcast %cst_14 : f32 to vector<128x128xf32>
    %31 = arith.maximumf %29, %30 : vector<128x128xf32>
    %cst_15 = arith.constant dense<0.000000e+00> : vector<128xf32>
    %32 = vector.multi_reduction <add>, %31, %cst_15 [0] : vector<128x128xf32> to vector<128xf32>
    %33 = vector.shape_cast %32 : vector<128xf32> to vector<1x128xf32>
    %cst_16 = arith.constant 7.812500e-03 : f32
    %34 = vector.broadcast %cst_16 : f32 to vector<1x128xf32>
    %35 = arith.mulf %33, %34 : vector<1x128xf32>
    %36 = arith.mulf %31, %31 : vector<128x128xf32>
    %cst_17 = arith.constant dense<0.000000e+00> : vector<128xf32>
    %37 = vector.multi_reduction <add>, %36, %cst_17 [0] : vector<128x128xf32> to vector<128xf32>
    %38 = vector.shape_cast %37 : vector<128xf32> to vector<1x128xf32>
    %cst_18 = arith.constant 7.812500e-03 : f32
    %39 = vector.broadcast %cst_18 : f32 to vector<1x128xf32>
    %40 = arith.mulf %38, %39 : vector<1x128xf32>
    %41 = arith.mulf %35, %35 : vector<1x128xf32>
    %42 = arith.subf %40, %41 : vector<1x128xf32>
    %43 = vector.broadcast %35 : vector<1x128xf32> to vector<128x128xf32>
    %44 = arith.subf %31, %43 : vector<128x128xf32>
    %cst_19 = arith.constant 9.99999974E-6 : f32
    %45 = vector.broadcast %cst_19 : f32 to vector<1x128xf32>
    %46 = arith.addf %42, %45 : vector<1x128xf32>
    %47 = math.rsqrt %46 : vector<1x128xf32>
    %48 = vector.broadcast %47 : vector<1x128xf32> to vector<128x128xf32>
    %49 = arith.mulf %44, %48 : vector<128x128xf32>
    %c0_20 = arith.constant 0 : index
    %c0_21 = arith.constant 0 : index
    %50 = vector.load %arg5[%c0_20, %c0_21] : memref<1x128xf32, #tpu.memory_space<vmem>>, vector<1x128xf32>
    %51 = vector.broadcast %50 : vector<1x128xf32> to vector<128x128xf32>
    %52 = arith.mulf %49, %51 : vector<128x128xf32>
    %c0_22 = arith.constant 0 : index
    %c0_23 = arith.constant 0 : index
    %53 = vector.load %arg6[%c0_22, %c0_23] : memref<1x128xf32, #tpu.memory_space<vmem>>, vector<1x128xf32>
    %54 = vector.broadcast %53 : vector<1x128xf32> to vector<128x128xf32>
    %55 = arith.addf %52, %54 : vector<128x128xf32>
    %c0_24 = arith.constant 0 : index
    %c0_25 = arith.constant 0 : index
    %56 = vector.load %arg7[%c0_24, %c0_25] : memref<128x128xf32, #tpu.memory_space<vmem>>, vector<128x128xf32>
    tpu.vector_store %arg7[%c0_24, %c0_25], %55 {strides = array<i32>} : memref<128x128xf32, #tpu.memory_space<vmem>>, vector<128x128xf32>,
    return
  }
}

</mosaic_0001>

<bundles_post_ra>
// kernel: tpu_custom_call.1
= control target key start
LH: loop header
LB: loop body
LE: loop exit
PB: predicated region body
PF: predicated region fallthrough
CT: control target
= control target key end

     0   :  { %vm51_vm0 = vcmask 261120   ;;  %s974_s0 = inlined_call_operand.vmem [shape: f32[128,32], index: 0, kind: input, shape index: {}]   ;;  %s975_s1 = inlined_call_operand.vmem [shape: f32[32,128], index: 1, kind: input, shape index: {}]   ;;  %s976_s2 = inlined_call_operand.vmem [shape: f32[1,128], index: 2, kind: input, shape index: {}]   ;;  %s977_s3 = inlined_call_operand.vmem [shape: f32[1,128], index: 3, kind: input, shape index: {}]   ;;  %s978_s4 = inlined_call_operand.vmem [shape: f32[1,128], index: 4, kind: input, shape index: {}]   ;;  %s979_s5 = inlined_call_operand.vmem [shape: f32[1,128], index: 5, kind: input, shape index: {}]   ;;  %s980_s6 = inlined_call_operand.vmem [shape: f32[1,128], index: 6, kind: input, shape index: {}]   ;;  %s981_s7 = inlined_call_operand.hbm [shape: f32[128,128], index: 7, kind: output, shape index: {}]  }
   0x1   :  { %v46_v0 = vld [vmem:[%s975_s1 + $0x18] sm:$0xff]  ;;  %v45_v1 = vld [vmem:[%s975_s1 + $0x10] sm:$0xff]  ;;  %v44_v2 = vld [vmem:[%s975_s1 + $0x8] sm:$0xff] }
   0x2   :  { %112 = vmatpush.msra.mxu0 %v46_v0  ;;  %521 = vmatpush.msra.mxu1 %v46_v0  ;;  %v43_v3 = vld [vmem:[%s975_s1] sm:$0xff] }
   0x3   :  { %522 = vmatpush.msra.mxu2 %v46_v0  ;;  %523 = vmatpush.msra.mxu3 %v46_v0  ;;  %v27_v4 = vld [vmem:[%s974_s0] sm:$0xff] }
   0x4   :  { %113 = vmatpush.msra.mxu0 %v45_v1  ;;  %524 = vmatpush.msra.mxu1 %v45_v1  ;;  %v31_v5 = vld [vmem:[%s974_s0 + $0x20] sm:$0xff] }
   0x5   :  { %525 = vmatpush.msra.mxu2 %v45_v1  ;;  %526 = vmatpush.msra.mxu3 %v45_v1  ;;  %v35_v6 = vld [vmem:[%s974_s0 + $0x40] sm:$0xff] }
   0x6   :  { %114 = vmatpush.msra.mxu0 %v44_v2  ;;  %527 = vmatpush.msra.mxu1 %v44_v2  ;;  %v39_v7 = vld [vmem:[%s974_s0 + $0x60] sm:$0xff] }
   0x7   :  { %528 = vmatpush.msra.mxu2 %v44_v2  ;;  %529 = vmatpush.msra.mxu3 %v44_v2 }
   0x8   :  { %115 = vmatpush.msra.mxu0 %v43_v3  ;;  %530 = vmatpush.msra.mxu1 %v43_v3 }
   0x9   :  { %505 = vmatmul.msk.f32.vlgmr.msra.gmra.mxu0 %vm51_vm0, %v27_v4  ;;  %509 = vmatmul.msk.f32.vlgmr.msra.gmra.mxu1 %vm51_vm0, %v31_v5 }
   0xa   :  { %12 = vsyncpa [#allocation3], 0  ;;  %531 = vmatpush.msra.mxu2 %v43_v3  ;;  %532 = vmatpush.msra.mxu3 %v43_v3  ;;  %v28_v8 = vld [vmem:[%s974_s0 + $0x8] sm:$0xff]  ;;  %v29_v12 = vld [vmem:[%s974_s0 + $0x10] sm:$0xff]  ;;  %s493_s24 = sshll.u32 %s981_s7, 4  ;;  %s572_s25 = smov 128   ;;  %s494_s24 = int_to_ptr.hbm [resolvable:$true] %s493_s24 }
   0xb   :  { %513 = vmatmul.msk.f32.vlgmr.msra.gmra.mxu2 %vm51_vm0, %v35_v6  ;;  %517 = vmatmul.msk.f32.vlgmr.msra.gmra.mxu3 %vm51_vm0, %v39_v7  ;;  %v32_v9 = vld [vmem:[%s974_s0 + $0x28] sm:$0xff]  ;;  %v33_v13 = vld [vmem:[%s974_s0 + $0x30] sm:$0xff]  ;;  %v30_v16 = vld [vmem:[%s974_s0 + $0x18] sm:$0xff]  ;;  %s573_s26 = smov 8  }
   0xc   :  { %v36_v10 = vld [vmem:[%s974_s0 + $0x48] sm:$0xff]  ;;  %v37_v14 = vld [vmem:[%s974_s0 + $0x50] sm:$0xff]  ;;  %v34_v17 = vld [vmem:[%s974_s0 + $0x38] sm:$0xff] }
   0xd   :  { %v40_v11 = vld [vmem:[%s974_s0 + $0x68] sm:$0xff]  ;;  %v41_v15 = vld [vmem:[%s974_s0 + $0x70] sm:$0xff]  ;;  %v38_v18 = vld [vmem:[%s974_s0 + $0x58] sm:$0xff] }
   0xe   :  { %v42_v19 = vld [vmem:[%s974_s0 + $0x78] sm:$0xff]  ;;  %v536_v26 = vld [vmem:[%s976_s2] ss:$0 sm:$0xff] }
  0x11   :  { %506 = vmatmul.msk.f32.gmra.mxu0 %vm51_vm0, %v28_v8  ;;  %510 = vmatmul.msk.f32.gmra.mxu1 %vm51_vm0, %v32_v9 }
  0x13   :  { %514 = vmatmul.msk.f32.gmra.mxu2 %vm51_vm0, %v36_v10  ;;  %518 = vmatmul.msk.f32.gmra.mxu3 %vm51_vm0, %v40_v11 }
  0x19   :  { %507 = vmatmul.msk.f32.gmra.mxu0 %vm51_vm0, %v29_v12  ;;  %511 = vmatmul.msk.f32.gmra.mxu1 %vm51_vm0, %v33_v13 }
  0x1b   :  { %515 = vmatmul.msk.f32.gmra.mxu2 %vm51_vm0, %v37_v14  ;;  %519 = vmatmul.msk.f32.gmra.mxu3 %vm51_vm0, %v41_v15 }
  0x21   :  { %508 = vmatmul.msk.f32.gmra.mxu0 %vm51_vm0, %v30_v16  ;;  %512 = vmatmul.msk.f32.gmra.mxu1 %vm51_vm0, %v34_v17 }
  0x23   :  { %516 = vmatmul.msk.f32.gmra.mxu2 %vm51_vm0, %v38_v18  ;;  %520 = vmatmul.msk.f32.gmra.mxu3 %vm51_vm0, %v42_v19 }
  0x86   :  { %v117_v20 = vpop.f32.mrf.mxu0  ;;  %v129_v21 = vpop.f32.mrf.mxu1 }
  0x87   :  { %v695_v31 = vadd.f32 %v536_v26, %v117_v20  ;;  %v707_v38 = vadd.f32 %v536_v26, %v129_v21 }
  0x89   :  { %v187_v35 = vmul.f32 %v695_v31, %v695_v31  ;;  %v191_v49 = vmul.f32 %v707_v38, %v707_v38 }
  0x8e   :  { %v120_v22 = vpop.f32.mrf.mxu0  ;;  %v132_v23 = vpop.f32.mrf.mxu1 }
  0x8f   :  { %v141_v24 = vpop.f32.mrf.mxu2  ;;  %v153_v25 = vpop.f32.mrf.mxu3  ;;  %v693_v29 = vadd.f32 %v536_v26, %v120_v22  ;;  %v712_v46 = vadd.f32 %v536_v26, %v132_v23 }
  0x90   :  { %v727_v57 = vadd.f32 %v536_v26, %v141_v24  ;;  %v747_v11 = vadd.f32 %v536_v26, %v153_v25 }
  0x91   :  { %v188_v33 = vmul.f32 %v693_v29, %v693_v29  ;;  %v165_v36 = vadd.f32 %v693_v29, %v695_v31  ;;  %v192_v54 = vmul.f32 %v712_v46, %v712_v46 }
  0x92   :  { %v195_v3 = vmul.f32 %v727_v57, %v727_v57  ;;  %v199_v20 = vmul.f32 %v747_v11, %v747_v11 }
  0x93   :  { %v203_v40 = vadd.f32 %v188_v33, %v187_v35 }
  0x96   :  { %v123_v27 = vpop.f32.mrf.mxu0  ;;  %v135_v28 = vpop.f32.mrf.mxu1 }
  0x97   :  { %v144_v30 = vpop.f32.mrf.mxu2  ;;  %v697_v32 = vadd.f32 %v536_v26, %v123_v27  ;;  %v156_v34 = vpop.f32.mrf.mxu3  ;;  %v720_v52 = vadd.f32 %v536_v26, %v135_v28 }
  0x98   :  { %v734_v1 = vadd.f32 %v536_v26, %v144_v30  ;;  %v754_v18 = vadd.f32 %v536_v26, %v156_v34 }
  0x99   :  { %v189_v37 = vmul.f32 %v697_v32, %v697_v32  ;;  %v166_v41 = vadd.f32 %v165_v36, %v697_v32  ;;  %v193_v60 = vmul.f32 %v720_v52, %v720_v52 }
  0x9a   :  { %v196_v8 = vmul.f32 %v734_v1, %v734_v1  ;;  %v200_v25 = vmul.f32 %v754_v18, %v754_v18 }
  0x9b   :  { %v204_v45 = vadd.f32 %v203_v40, %v189_v37 }
  0x9e   :  { %v126_v39 = vpop.f32.mrf.mxu0  ;;  %v138_v44 = vpop.f32.mrf.mxu1 }
  0x9f   :  { %v710_v42 = vadd.f32 %v536_v26, %v126_v39  ;;  %v147_v43 = vpop.f32.mrf.mxu2  ;;  %v722_v53 = vadd.f32 %v536_v26, %v138_v44  ;;  %v159_v58 = vpop.f32.mrf.mxu3 }
  0xa0   :  { %v740_v6 = vadd.f32 %v536_v26, %v147_v43  ;;  %v760_v23 = vadd.f32 %v536_v26, %v159_v58 }
  0xa1   :  { %v167_v47 = vadd.f32 %v166_v41, %v710_v42  ;;  %v190_v48 = vmul.f32 %v710_v42, %v710_v42  ;;  %v194_v62 = vmul.f32 %v722_v53, %v722_v53 }
  0xa2   :  { %v197_v13 = vmul.f32 %v740_v6, %v740_v6  ;;  %v201_v33 = vmul.f32 %v760_v23, %v760_v23 }
  0xa3   :  { %v168_v50 = vadd.f32 %v167_v47, %v707_v38  ;;  %v205_v51 = vadd.f32 %v204_v45, %v190_v48 }
  0xa5   :  { %v206_v55 = vadd.f32 %v205_v51, %v191_v49  ;;  %v169_v56 = vadd.f32 %v168_v50, %v712_v46 }
  0xa7   :  { %v170_v59 = vadd.f32 %v169_v56, %v720_v52  ;;  %v207_v61 = vadd.f32 %v206_v55, %v192_v54  ;;  %v150_v63 = vpop.f32.mrf.mxu2  ;;  %v162_v16 = vpop.f32.mrf.mxu3 }
  0xa8   :  { %v742_v7 = vadd.f32 %v536_v26, %v150_v63  ;;  %v762_v24 = vadd.f32 %v536_v26, %v162_v16  ;;  %v800_v16 = vld [vmem:[%s978_s4] ss:$0 sm:$0xff] }
  0xa9   :  { %v208_v0 = vadd.f32 %v207_v61, %v193_v60  ;;  %v171_v2 = vadd.f32 %v170_v59, %v722_v53 }
  0xaa   :  { %v198_v15 = vmul.f32 %v742_v7, %v742_v7  ;;  %v202_v35 = vmul.f32 %v762_v24, %v762_v24 }
  0xab   :  { %v172_v4 = vadd.f32 %v171_v2, %v727_v57  ;;  %v209_v5 = vadd.f32 %v208_v0, %v194_v62 }
  0xad   :  { %v210_v9 = vadd.f32 %v209_v5, %v195_v3  ;;  %v173_v10 = vadd.f32 %v172_v4, %v734_v1 }
  0xaf   :  { %v174_v12 = vadd.f32 %v173_v10, %v740_v6  ;;  %v211_v14 = vadd.f32 %v210_v9, %v196_v8 }
  0xb1   :  { %v212_v17 = vadd.f32 %v211_v14, %v197_v13  ;;  %v175_v19 = vadd.f32 %v174_v12, %v742_v7  ;;  %v788_v12 = vld [vmem:[%s977_s3] ss:$0 sm:$0xff] }
  0xb3   :  { %v176_v21 = vadd.f32 %v175_v19, %v747_v11  ;;  %v213_v22 = vadd.f32 %v212_v17, %v198_v15 }
  0xb5   :  { %v214_v27 = vadd.f32 %v213_v22, %v199_v20  ;;  %v177_v28 = vadd.f32 %v176_v21, %v754_v18 }
  0xb7   :  { %v178_v30 = vadd.f32 %v177_v28, %v760_v23  ;;  %v215_v34 = vadd.f32 %v214_v27, %v200_v25 }
  0xb9   :  { %v216_v36 = vadd.f32 %v215_v34, %v201_v33  ;;  %v179_v37 = vadd.f32 %v178_v30, %v762_v24 }
  0xbb   :  { %v180_v26 = vrot.slane %v179_v37, 4  ;;  %v217_v39 = vadd.f32 %v216_v36, %v202_v35 }
  0xbd   :  { %v181_v40 = vadd.f32 %v180_v26, %v179_v37  ;;  %v218_v41 = vrot.slane %v217_v39, 4 }
  0xbf   :  { %v182_v43 = vrot.slane %v181_v40, 2  ;;  %v219_v44 = vadd.f32 %v218_v41, %v217_v39 }
  0xc1   :  { %v183_v45 = vadd.f32 %v182_v43, %v181_v40  ;;  %v220_v47 = vrot.slane %v219_v44, 2 }
  0xc3   :  { %v184_v48 = vrot.slane %v183_v45, 1  ;;  %v221_v49 = vadd.f32 %v220_v47, %v219_v44 }
  0xc5   :  { %v185_v50 = vadd.f32 %v184_v48, %v183_v45  ;;  %v222_v51 = vrot.slane %v221_v49, 1 }
  0xc7   :  { %v773_v54 = vmul.f32 0.0078125, %v185_v50  ;;  %v223_v55 = vadd.f32 %v222_v51, %v221_v49 }
  0xc9   :  { %v224_v56 = vmul.f32 0.0078125, %v223_v55  ;;  %v225_v58 = vmul.f32 %v773_v54, %v773_v54  ;;  %v227_v4 = vsub.f32 %v695_v31, %v773_v54  ;;  %v228_v5 = vsub.f32 %v693_v29, %v773_v54 }
  0xca   :  { %v229_v13 = vsub.f32 %v697_v32, %v773_v54  ;;  %v230_v31 = vsub.f32 %v710_v42, %v773_v54  ;;  %v231_v17 = vsub.f32 %v707_v38, %v773_v54  ;;  %v232_v42 = vsub.f32 %v712_v46, %v773_v54 }
  0xcb   :  { %v226_v59 = vsub.f32 %v224_v56, %v225_v58  ;;  %v233_v25 = vsub.f32 %v720_v52, %v773_v54  ;;  %v234_v28 = vsub.f32 %v722_v53, %v773_v54  ;;  %v235_v52 = vsub.f32 %v727_v57, %v773_v54 }
  0xcc   :  { %v236_v53 = vsub.f32 %v734_v1, %v773_v54  ;;  %v237_v1 = vsub.f32 %v740_v6, %v773_v54  ;;  %v238_v55 = vsub.f32 %v742_v7, %v773_v54 }
  0xcd   :  { %v243_v60 = vadd.f32 1e-05, %v226_v59 }
  0xcf   :  { %541 = vrsqrt.f32 %v243_v60  ;;  %vm250_vm2 = vweird.f32 %v243_v60 }
  0xd5   :  { %v542_v61 = vpop.eup %541 }
  0xd6   :  { %v245_v62 = vmul.f32 %v542_v61, %v243_v60  ;;  %vm251_vm1 = vweird.f32 %v542_v61 }
  0xd7   :  { %vm252_vm3 = vmor %vm250_vm2, %vm251_vm1 }
  0xd8   :  { %v246_v63 = vmul.f32 %v542_v61, %v245_v62 }
  0xda   :  { %v247_v0 = vmul.f32 0.5, %v246_v63  ;;  %v239_v63 = vsub.f32 %v747_v11, %v773_v54 }
  0xdc   :  { %v248_v2 = vsub.f32 1.5, %v247_v0 }
  0xde   :  { %v249_v3 = vmul.f32 %v542_v61, %v248_v2 }
  0xe0   :  { %v781_v8 = vsel %vm252_vm3, %v542_v61, %v249_v3 }
  0xe1   :  { %v254_v9 = vmul.f32 %v781_v8, %v227_v4  ;;  %v255_v10 = vmul.f32 %v781_v8, %v228_v5  ;;  %v256_v29 = vmul.f32 %v781_v8, %v229_v13  ;;  %v257_v19 = vmul.f32 %v781_v8, %v230_v31 }
  0xe2   :  { %v258_v32 = vmul.f32 %v781_v8, %v231_v17  ;;  %v259_v27 = vmul.f32 %v781_v8, %v232_v42  ;;  %v260_v30 = vmul.f32 %v781_v8, %v233_v25  ;;  %v261_v36 = vmul.f32 %v781_v8, %v234_v28 }
  0xe3   :  { %v274_v14 = vmul.f32 %v788_v12, %v254_v9  ;;  %v275_v15 = vmul.f32 %v788_v12, %v255_v10  ;;  %v276_v20 = vmul.f32 %v788_v12, %v256_v29  ;;  %v277_v38 = vmul.f32 %v788_v12, %v257_v19 }
  0xe4   :  { %v278_v46 = vmul.f32 %v788_v12, %v258_v32  ;;  %v279_v37 = vmul.f32 %v788_v12, %v259_v27  ;;  %v262_v39 = vmul.f32 %v781_v8, %v235_v52  ;;  %v280_v40 = vmul.f32 %v788_v12, %v260_v30 }
  0xe5   :  { %v294_v21 = vadd.f32 %v800_v16, %v274_v14  ;;  %v295_v22 = vadd.f32 %v800_v16, %v275_v15  ;;  %v296_v33 = vadd.f32 %v800_v16, %v276_v20  ;;  %v297_v26 = vadd.f32 %v800_v16, %v277_v38 }
  0xe6   :  { %v298_v41 = vadd.f32 %v800_v16, %v278_v46  ;;  %v263_v47 = vmul.f32 %v781_v8, %v236_v53  ;;  %v281_v48 = vmul.f32 %v788_v12, %v261_v36  ;;  %v299_v49 = vadd.f32 %v800_v16, %v279_v37 }
  0xe7   :  { %v820_v34 = vmax.f32 %v294_v21, 0.0  ;;  %v822_v35 = vmax.f32 %v295_v22, 0.0  ;;  %v834_v43 = vmax.f32 %v296_v33, 0.0  ;;  %v847_v50 = vmax.f32 %v297_v26, 0.0 }
  0xe8   :  { %v264_v56 = vmul.f32 %v781_v8, %v237_v1  ;;  %v282_v58 = vmul.f32 %v788_v12, %v262_v39  ;;  %v300_v59 = vadd.f32 %v800_v16, %v280_v40  ;;  %v855_v6 = vmax.f32 %v298_v41, 0.0 }
  0xe9   :  { %v326_v57 = vadd.f32 %v822_v35, %v820_v34  ;;  %v348_v44 = vmul.f32 %v820_v34, %v820_v34  ;;  %v349_v45 = vmul.f32 %v822_v35, %v822_v35  ;;  %v350_v61 = vmul.f32 %v834_v43, %v834_v43 }
  0xea   :  { %v265_v0 = vmul.f32 %v781_v8, %v238_v55  ;;  %v283_v7 = vmul.f32 %v788_v12, %v263_v47  ;;  %v301_v2 = vadd.f32 %v800_v16, %v281_v48  ;;  %v865_v3 = vmax.f32 %v299_v49, 0.0 }
  0xeb   :  { %v327_v51 = vadd.f32 %v326_v57, %v834_v43  ;;  %v364_v62 = vadd.f32 %v349_v45, %v348_v44  ;;  %v351_v5 = vmul.f32 %v847_v50, %v847_v50  ;;  %v240_v10 = vsub.f32 %v754_v18, %v773_v54 }
  0xec   :  { %v266_v13 = vmul.f32 %v781_v8, %v239_v63  ;;  %v284_v11 = vmul.f32 %v788_v12, %v264_v56  ;;  %v302_v31 = vadd.f32 %v800_v16, %v282_v58  ;;  %v875_v29 = vmax.f32 %v300_v59, 0.0 }
  0xed   :  { %v328_v60 = vadd.f32 %v327_v51, %v847_v50  ;;  %v365_v9 = vadd.f32 %v364_v62, %v350_v61  ;;  %v352_v15 = vmul.f32 %v855_v6, %v855_v6  ;;  %v241_v19 = vsub.f32 %v760_v23, %v773_v54 }
  0xee   :  { %v267_v32 = vmul.f32 %v781_v8, %v240_v10  ;;  %v285_v18 = vmul.f32 %v788_v12, %v265_v0  ;;  %v303_v42 = vadd.f32 %v800_v16, %v283_v7  ;;  %v885_v20 = vmax.f32 %v301_v2, 0.0 }
  0xef   :  { %v329_v4 = vadd.f32 %v328_v60, %v855_v6  ;;  %v366_v17 = vadd.f32 %v365_v9, %v351_v5  ;;  %v353_v22 = vmul.f32 %v865_v3, %v865_v3  ;;  %v242_v27 = vsub.f32 %v762_v24, %v773_v54 }
  0xf0   :  { %v268_v38 = vmul.f32 %v781_v8, %v241_v19  ;;  %v286_v23 = vmul.f32 %v788_v12, %v266_v13  ;;  %v304_v28 = vadd.f32 %v800_v16, %v284_v11  ;;  %v895_v30 = vmax.f32 %v302_v31, 0.0 }
  0xf1   :  { %v330_v14 = vadd.f32 %v329_v4, %v865_v3  ;;  %v367_v25 = vadd.f32 %v366_v17, %v352_v15  ;;  %v354_v33 = vmul.f32 %v875_v29, %v875_v29  ;;  %v269_v36 = vmul.f32 %v781_v8, %v242_v27 }
  0xf2   :  { %v287_v37 = vmul.f32 %v788_v12, %v267_v32  ;;  %v305_v24 = vadd.f32 %v800_v16, %v285_v18  ;;  %v903_v54 = vmax.f32 %v303_v42, 0.0  ;;  %v355_v53 = vmul.f32 %v885_v20, %v885_v20 }
  0xf3   :  { %v331_v21 = vadd.f32 %v330_v14, %v875_v29  ;;  %v368_v52 = vadd.f32 %v367_v25, %v353_v22  ;;  %v288_v40 = vmul.f32 %v788_v12, %v268_v38  ;;  %v306_v41 = vadd.f32 %v800_v16, %v286_v23 }
  0xf4   :  { %v910_v57 = vmax.f32 %v304_v28, 0.0  ;;  %v356_v44 = vmul.f32 %v895_v30, %v895_v30  ;;  %v289_v1 = vmul.f32 %v788_v12, %v269_v36  ;;  %v307_v47 = vadd.f32 %v800_v16, %v287_v37 }
  0xf5   :  { %v332_v46 = vadd.f32 %v331_v21, %v885_v20  ;;  %v369_v39 = vadd.f32 %v368_v52, %v354_v33  ;;  %v917_v48 = vmax.f32 %v305_v24, 0.0  ;;  %v357_v51 = vmul.f32 %v903_v54, %v903_v54 }
  0xf6   :  { %v308_v56 = vadd.f32 %v800_v16, %v288_v40  ;;  %v923_v58 = vmax.f32 %v306_v41, 0.0  ;;  %v358_v60 = vmul.f32 %v910_v57, %v910_v57  ;;  %v309_v61 = vadd.f32 %v800_v16, %v289_v1 }
  0xf7   :  { %v333_v26 = vadd.f32 %v332_v46, %v895_v30  ;;  %v370_v45 = vadd.f32 %v369_v39, %v355_v53  ;;  %v929_v62 = vmax.f32 %v307_v47, 0.0  ;;  %v359_v0 = vmul.f32 %v917_v48, %v917_v48 }
  0xf8   :  { %v934_v2 = vmax.f32 %v308_v56, 0.0  ;;  %v360_v5 = vmul.f32 %v923_v58, %v923_v58  ;;  %v939_v10 = vmax.f32 %v309_v61, 0.0 }
  0xf9   :  { %v334_v8 = vadd.f32 %v333_v26, %v903_v54  ;;  %v371_v55 = vadd.f32 %v370_v45, %v356_v44  ;;  %v361_v13 = vmul.f32 %v929_v62, %v929_v62 }
  0xfa   :  { %v362_v14 = vmul.f32 %v934_v2, %v934_v2  ;;  %v363_v19 = vmul.f32 %v939_v10, %v939_v10 }
  0xfb   :  { %v335_v49 = vadd.f32 %v334_v8, %v910_v57  ;;  %v372_v12 = vadd.f32 %v371_v55, %v357_v51 }
  0xfd   :  { %v336_v59 = vadd.f32 %v335_v49, %v917_v48  ;;  %v373_v7 = vadd.f32 %v372_v12, %v358_v60  ;;  %v539_v12 = vld [vmem:[%s979_s5] ss:$0 sm:$0xff]  ;;  %s571_s5 = smov [#allocation2]  }
  0xff   :  { %v337_v63 = vadd.f32 %v336_v59, %v923_v58  ;;  %v374_v9 = vadd.f32 %v373_v7, %v359_v0 }
 0x101   :  { %v338_v4 = vadd.f32 %v337_v63, %v929_v62  ;;  %v375_v11 = vadd.f32 %v374_v9, %v360_v5 }
 0x103   :  { %v339_v16 = vadd.f32 %v338_v4, %v934_v2  ;;  %v376_v15 = vadd.f32 %v375_v11, %v361_v13 }
 0x105   :  { %v340_v31 = vadd.f32 %v339_v16, %v939_v10  ;;  %v377_v32 = vadd.f32 %v376_v15, %v362_v14  ;;  %v540_v15 = vld [vmem:[%s980_s6] ss:$0 sm:$0xff]  ;;  %s491_s6 = sshll.u32 %s571_s5, 4  ;;  %s492_s6 = int_to_ptr.vmem [resolvable:$true] %s491_s6 }
 0x107   :  { %v341_v17 = vrot.slane %v340_v31, 4  ;;  %v378_v42 = vadd.f32 %v377_v32, %v363_v19 }
 0x109   :  { %v342_v18 = vadd.f32 %v341_v17, %v340_v31  ;;  %v379_v22 = vrot.slane %v378_v42, 4 }
 0x10b   :  { %v343_v21 = vrot.slane %v342_v18, 2  ;;  %v380_v27 = vadd.f32 %v379_v22, %v378_v42 }
 0x10d   :  { %v344_v25 = vadd.f32 %v343_v21, %v342_v18  ;;  %v381_v23 = vrot.slane %v380_v27, 2 }
 0x10f   :  { %v345_v38 = vrot.slane %v344_v25, 1  ;;  %v382_v46 = vadd.f32 %v381_v23, %v380_v27 }
 0x111   :  { %v346_v28 = vadd.f32 %v345_v38, %v344_v25  ;;  %v383_v52 = vrot.slane %v382_v46, 1 }
 0x113   :  { %v347_v33 = vmul.f32 0.0078125, %v346_v28  ;;  %v384_v36 = vadd.f32 %v383_v52, %v382_v46 }
 0x115   :  { %v386_v37 = vmul.f32 %v347_v33, %v347_v33  ;;  %v388_v24 = vsub.f32 %v820_v34, %v347_v33  ;;  %v389_v26 = vsub.f32 %v822_v35, %v347_v33  ;;  %v390_v53 = vsub.f32 %v834_v43, %v347_v33 }
 0x116   :  { %v391_v39 = vsub.f32 %v847_v50, %v347_v33  ;;  %v392_v40 = vsub.f32 %v855_v6, %v347_v33  ;;  %v393_v41 = vsub.f32 %v865_v3, %v347_v33  ;;  %v385_v8 = vmul.f32 0.0078125, %v384_v36 }
 0x117   :  { %v394_v44 = vsub.f32 %v875_v29, %v347_v33  ;;  %v395_v45 = vsub.f32 %v885_v20, %v347_v33  ;;  %v396_v1 = vsub.f32 %v895_v30, %v347_v33  ;;  %v397_v47 = vsub.f32 %v903_v54, %v347_v33 }
 0x118   :  { %v398_v34 = vsub.f32 %v910_v57, %v347_v33  ;;  %v399_v35 = vsub.f32 %v917_v48, %v347_v33  ;;  %v400_v43 = vsub.f32 %v923_v58, %v347_v33  ;;  %v387_v50 = vsub.f32 %v385_v8, %v386_v37 }
 0x119   :  { %v401_v6 = vsub.f32 %v929_v62, %v347_v33  ;;  %v402_v3 = vsub.f32 %v934_v2, %v347_v33  ;;  %v403_v49 = vsub.f32 %v939_v10, %v347_v33 }
 0x11a   :  { %v404_v29 = vadd.f32 1e-05, %v387_v50 }
 0x11c   :  { %543 = vrsqrt.f32 %v404_v29  ;;  %vm411_vm5 = vweird.f32 %v404_v29 }
 0x122   :  { %v544_v20 = vpop.eup %543 }
 0x123   :  { %v406_v51 = vmul.f32 %v544_v20, %v404_v29  ;;  %vm412_vm4 = vweird.f32 %v544_v20 }
 0x124   :  { %vm413_vm6 = vmor %vm411_vm5, %vm412_vm4 }
 0x125   :  { %v407_v30 = vmul.f32 %v544_v20, %v406_v51 }
 0x127   :  { %v408_v55 = vmul.f32 0.5, %v407_v30 }
 0x129   :  { %v409_v54 = vsub.f32 1.5, %v408_v55 }
 0x12b   :  { %v410_v57 = vmul.f32 %v544_v20, %v409_v54 }
 0x12d   :  { %v414_v48 = vsel %vm413_vm6, %v544_v20, %v410_v57 }
 0x12e   :  { %v415_v56 = vmul.f32 %v414_v48, %v388_v24  ;;  %v416_v58 = vmul.f32 %v414_v48, %v389_v26  ;;  %v417_v59 = vmul.f32 %v414_v48, %v390_v53  ;;  %v418_v60 = vmul.f32 %v414_v48, %v391_v39 }
 0x12f   :  { %v419_v61 = vmul.f32 %v414_v48, %v392_v40  ;;  %v420_v62 = vmul.f32 %v414_v48, %v393_v41  ;;  %v421_v63 = vmul.f32 %v414_v48, %v394_v44  ;;  %v422_v0 = vmul.f32 %v414_v48, %v395_v45 }
 0x130   :  { %v423_v7 = vmul.f32 %v414_v48, %v396_v1  ;;  %v424_v2 = vmul.f32 %v414_v48, %v397_v47  ;;  %v425_v4 = vmul.f32 %v414_v48, %v398_v34  ;;  %v426_v5 = vmul.f32 %v414_v48, %v399_v35 }
 0x131   :  { %v427_v9 = vmul.f32 %v414_v48, %v400_v43  ;;  %v428_v10 = vmul.f32 %v414_v48, %v401_v6  ;;  %v429_v16 = vmul.f32 %v414_v48, %v402_v3  ;;  %v430_v13 = vmul.f32 %v414_v48, %v403_v49 }
 0x132   :  { %v435_v11 = vmul.f32 %v539_v12, %v415_v56  ;;  %v436_v31 = vmul.f32 %v539_v12, %v416_v58  ;;  %v437_v14 = vmul.f32 %v539_v12, %v417_v59  ;;  %v438_v17 = vmul.f32 %v539_v12, %v418_v60 }
 0x133   :  { %v439_v19 = vmul.f32 %v539_v12, %v419_v61  ;;  %v440_v32 = vmul.f32 %v539_v12, %v420_v62  ;;  %v441_v18 = vmul.f32 %v539_v12, %v421_v63  ;;  %v442_v25 = vmul.f32 %v539_v12, %v422_v0 }
 0x134   :  { %v455_v42 = vadd.f32 %v540_v15, %v435_v11  ;;  %v456_v21 = vadd.f32 %v540_v15, %v436_v31  ;;  %v457_v22 = vadd.f32 %v540_v15, %v437_v14  ;;  %v458_v27 = vadd.f32 %v540_v15, %v438_v17 }
 0x135   :  { %v443_v38 = vmul.f32 %v539_v12, %v423_v7  ;;  %v459_v23 = vadd.f32 %v540_v15, %v439_v19  ;;  %v444_v28 = vmul.f32 %v539_v12, %v424_v2  ;;  %v460_v46 = vadd.f32 %v540_v15, %v440_v32 }
 0x136   :  { %471 = vst [vmem:[#allocation2] sm:$0xff] %v455_v42  ;;  %v445_v33 = vmul.f32 %v539_v12, %v425_v4  ;;  %v461_v52 = vadd.f32 %v540_v15, %v441_v18  ;;  %v446_v36 = vmul.f32 %v539_v12, %v426_v5  ;;  %v462_v37 = vadd.f32 %v540_v15, %v442_v25 }
 0x137   :  { %472 = vst [vmem:[#allocation2 + $0x8] sm:$0xff] %v456_v21  ;;  %v447_v24 = vmul.f32 %v539_v12, %v427_v9  ;;  %v463_v26 = vadd.f32 %v540_v15, %v443_v38  ;;  %v448_v53 = vmul.f32 %v539_v12, %v428_v10  ;;  %v464_v39 = vadd.f32 %v540_v15, %v444_v28 }
 0x138   :  { %473 = vst [vmem:[#allocation2 + $0x10] sm:$0xff] %v457_v22  ;;  %v449_v40 = vmul.f32 %v539_v12, %v429_v16  ;;  %v465_v41 = vadd.f32 %v540_v15, %v445_v33  ;;  %v450_v8 = vmul.f32 %v539_v12, %v430_v13  ;;  %v466_v44 = vadd.f32 %v540_v15, %v446_v36 }
 0x139   :  { %474 = vst [vmem:[#allocation2 + $0x18] sm:$0xff] %v458_v27  ;;  %v467_v45 = vadd.f32 %v540_v15, %v447_v24  ;;  %v468_v1 = vadd.f32 %v540_v15, %v448_v53 }
 0x13a   :  { %475 = vst [vmem:[#allocation2 + $0x20] sm:$0xff] %v459_v23  ;;  %v469_v47 = vadd.f32 %v540_v15, %v449_v40  ;;  %v470_v34 = vadd.f32 %v540_v15, %v450_v8 }
 0x13b   :  { %476 = vst [vmem:[#allocation2 + $0x28] sm:$0xff] %v460_v46 }
 0x13c   :  { %477 = vst [vmem:[#allocation2 + $0x30] sm:$0xff] %v461_v52 }
 0x13d   :  { %478 = vst [vmem:[#allocation2 + $0x38] sm:$0xff] %v462_v37 }
 0x13e   :  { %479 = vst [vmem:[#allocation2 + $0x40] sm:$0xff] %v463_v26 }
 0x13f   :  { %480 = vst [vmem:[#allocation2 + $0x48] sm:$0xff] %v464_v39 }
 0x140   :  { %481 = vst [vmem:[#allocation2 + $0x50] sm:$0xff] %v465_v41 }
 0x141   :  { %482 = vst [vmem:[#allocation2 + $0x58] sm:$0xff] %v466_v44 }
 0x142   :  { %483 = vst [vmem:[#allocation2 + $0x60] sm:$0xff] %v467_v45 }
 0x143   :  { %484 = vst [vmem:[#allocation2 + $0x68] sm:$0xff] %v468_v1 }
 0x144   :  { %485 = vst [vmem:[#allocation2 + $0x70] sm:$0xff] %v469_v47 }
 0x145   :  { %486 = vst [vmem:[#allocation2 + $0x78] sm:$0xff] %v470_v34 }
 0x146   :  { %499 = dma.vmem_to_hbm [thread:$0]  %s492_s6, 2048, %s494_s24, [#allocation3], %s572_s25, %s572_s25, %s573_s26  }
 0x147   :  { %569 = dma.done.wait [#allocation3], 2048  }
 0x148   :  { %570 = vsyncadd [#allocation3], 4294965248 }
 0x149   :  { %504 = vsyncpa [#allocation3], 1 }

</bundles_post_ra>
